<compile_context>
chip_gen: v7x
topology: tpu7x:2x2x1
jax: 0.10.0
libtpu: 0.0.40
codegen_flags: <defaults>
</compile_context>

<pallas_src>
import jax
import jax.numpy as jnp
from jax import lax
from jax.experimental import pallas as pl
from jax.experimental.pallas import tpu as pltpu


_INV_SQRT2 = 0.7071067811865476


def _ff_kernel(x_ref, w1_ref, b1_ref, w2_ref, b2_ref, o_ref, acc_ref):
    # x_ref: (tm, dim)        w1_ref: (dim, tn)   b1_ref: (1, tn)
    # w2_ref: (tn, dim)       b2_ref: (1, dim)
    # o_ref:  (tm, dim)       acc_ref: (tm, dim) f32 scratch (persists across the inner axis)
    j = pl.program_id(1)

    @pl.when(j == 0)
    def _init():
        acc_ref[...] = jnp.zeros_like(acc_ref)

    # First linear on this inner slice: native-dtype operands, f32 MXU accumulation.
    h = jnp.dot(x_ref[...], w1_ref[...], preferred_element_type=jnp.float32)
    h = h + b1_ref[...].astype(jnp.float32)

    # Exact GELU (erf-based) — matches torch.nn.functional.gelu default numerics.
    # TODO(synk): the tanh-approx GELU (EUP slot) is faster on v6e/v7x once compute-bound, but it
    # changes the module's numerics, so the exact form is kept.
    h = 0.5 * h * (1.0 + lax.erf(h * _INV_SQRT2))

    # Second linear: accumulate this inner slice's partial contribution to the output.
    acc_ref[...] += jnp.dot(h.astype(w2_ref.dtype), w2_ref[...],
                            preferred_element_type=jnp.float32)

    @pl.when(j == pl.num_programs(1) - 1)
    def _finalize():
        o_ref[...] = (acc_ref[...] + b2_ref[...].astype(jnp.float32)).astype(o_ref.dtype)


def _round_up(a, b):
    return -(-a // b) * b


def _device_info():
    """Returns (chip_tag, vmem_capacity_bytes, tensorcores_per_chip) with safe fallbacks."""
    kind = ""
    try:
        kind = jax.devices()[0].device_kind.lower()
    except Exception:
        pass
    if "v7" in kind:
        tag, default_vmem, n_tc = "v7x", 64 << 20, 2
    elif "v6" in kind:
        tag, default_vmem, n_tc = "v6e", 128 << 20, 1
    elif "v5" in kind:
        tag, default_vmem, n_tc = "v5e", 128 << 20, 1
    else:
        tag, default_vmem, n_tc = "unknown", 64 << 20, 1
    vmem_cap = default_vmem
    try:
        cap = int(pltpu.get_tpu_info().vmem_capacity_bytes)
        if cap > 0:
            vmem_cap = cap
    except Exception:
        pass  # keep conservative default if the introspection API differs
    return tag, vmem_cap, n_tc


def _tile_footprint(tm, tn, dim, act_itemsize, w_itemsize):
    # Double-buffered x/out tiles + double-buffered W1/W2 slices + f32 accumulator + biases
    # + ~2 MiB compiler-internal scratch slack.
    return (2 * 2 * tm * dim * act_itemsize        # x tile + out tile (x2 buffers each)
            + 2 * 2 * tn * dim * w_itemsize        # W1 slice + W2 slice (x2 buffers each)
            + tm * dim * 4                         # f32 accumulator scratch
            + 2 * 2 * (tn + dim) * w_itemsize      # b1 slice + b2 (x2 buffers)
            + (2 << 20))


def _select_tiles(M, dim, act_itemsize, w_itemsize):
    """Chip-aware (tm, tn, vmem_budget) selection; shrinks tiles to fit rather than over-request."""
    tag, vmem_cap, n_tc = _device_info()
    budget = max(vmem_cap - (16 << 20), 24 << 20)   # >=16 MiB headroom for compiler scratch

    if tag == "v7x":
        tm_pref, tm_q = 512, 256
    elif tag == "v6e":
        tm_pref, tm_q = 1024, 256
    elif tag == "v5e":
        tm_pref, tm_q = (256, 128) if w_itemsize <= 2 else (512, 128)
    else:
        tm_pref, tm_q = 256, 128

    if w_itemsize <= 2:
        tn_pref = 1024 if tag in ("v5e", "v6e") else 512
        tn_min = 512
    else:
        tn_pref, tn_min = 512, 256

    # v7x megacore: make sure the "parallel" i axis has >=2 programs when M permits, so both
    # TensorCores are engaged (grid axes are sharded across cores).
    if n_tc > 1 and M >= n_tc * tm_q:
        tm_pref = min(tm_pref, max(tm_q, _round_up(-(-M // n_tc), tm_q)))

    tm, tn = tm_pref, tn_pref
    # Shrink to fit the device budget (tm first, then tn).
    # TODO(synk): for very large dim (>=8192) prefer tiling output columns of the 2nd matmul
    # instead of shrinking tm, to preserve weight reuse.
    while _tile_footprint(tm, tn, dim, act_itemsize, w_itemsize) > budget and tm > tm_q:
        tm = max(tm_q, tm - tm_q)
    while _tile_footprint(tm, tn, dim, act_itemsize, w_itemsize) > budget and tn > tn_min:
        tn = max(tn_min, tn // 2)
    return tm, tn, budget


def feed_forward(x, w1, b1, w2, b2, *, tm=None, tn=None):
    """FeedForward: GELU(x @ W1 + b1) @ W2 + b2.  Dropout(p=0.0) is the identity.

    x: (..., dim); w1: (dim, inner); b1: (inner,); w2: (inner, dim); b2: (dim,).
    """
    orig_shape = x.shape
    dim = x.shape[-1]
    inner = w1.shape[1]
    M = 1
    for s in orig_shape[:-1]:
        M *= s

    x2d = x.reshape(M, dim)
    act_itemsize = jnp.dtype(x.dtype).itemsize
    w_itemsize = jnp.dtype(w1.dtype).itemsize

    tm_auto, tn_auto, budget = _select_tiles(M, dim, act_itemsize, w_itemsize)
    if tm is None:
        tm = tm_auto
    if tn is None:
        tn = tn_auto

    # --- Row tiling: pad M so it divides evenly by the row tile (handles any batch*seq). ---
    if M >= tm:
        M_pad = _round_up(M, tm)
        tm_eff = tm
    else:
        M_pad = _round_up(M, 8)      # sublane-aligned small case (full-extent tile is legal)
        tm_eff = M_pad
    if M_pad != M:
        x2d = jnp.pad(x2d, ((0, M_pad - M), (0, 0)))

    # --- Inner tiling: zero-pad so the reduction axis divides evenly (GELU(0)=0 and zero W2 rows
    #     contribute nothing, so padding is exact). ---
    if inner >= tn:
        inner_pad = _round_up(inner, tn)
        tn_eff = tn
    else:
        inner_pad = _round_up(inner, 128)   # lane-aligned small case
        tn_eff = inner_pad
    if inner_pad != inner:
        w1 = jnp.pad(w1, ((0, 0), (0, inner_pad - inner)))
        b1 = jnp.pad(b1, ((0, inner_pad - inner),))
        w2 = jnp.pad(w2, ((0, inner_pad - inner), (0, 0)))

    b1_2d = b1.reshape(1, inner_pad)
    b2_2d = b2.reshape(1, dim)

    grid = (M_pad // tm_eff, inner_pad // tn_eff)

    # --- VMEM limit from the actual tile footprint, capped at the device budget. ---
    fp = _tile_footprint(tm_eff, tn_eff, dim, act_itemsize, w_itemsize)
    vmem_bytes = int(min(budget, max(fp + (4 << 20), 16 << 20)))

    out2d = pl.pallas_call(
        _ff_kernel,
        out_shape=jax.ShapeDtypeStruct((M_pad, dim), x.dtype),
        grid_spec=pltpu.PrefetchScalarGridSpec(
            num_scalar_prefetch=0,
            grid=grid,
            in_specs=[
                pl.BlockSpec((tm_eff, dim), lambda i, j: (i, 0)),    # x row tile (resident over j)
                pl.BlockSpec((dim, tn_eff), lambda i, j: (0, j)),    # W1 inner slice (streamed)
                pl.BlockSpec((1, tn_eff), lambda i, j: (0, j)),      # b1 inner slice
                pl.BlockSpec((tn_eff, dim), lambda i, j: (j, 0)),    # W2 inner slice (streamed)
                pl.BlockSpec((1, dim), lambda i, j: (0, 0)),         # b2 (resident)
            ],
            out_specs=pl.BlockSpec((tm_eff, dim), lambda i, j: (i, 0)),
            scratch_shapes=[pltpu.VMEM((tm_eff, dim), jnp.float32)],
        ),
        compiler_params=pltpu.CompilerParams(
            dimension_semantics=("parallel", "arbitrary"),
            vmem_limit_bytes=vmem_bytes,
        ),
    )(x2d, w1, b1_2d, w2, b2_2d)

    if M_pad != M:
        out2d = out2d[:M]
    return out2d.reshape(orig_shape)


def reference_feed_forward(x, w1, b1, w2, b2):
    h = jnp.einsum("bsd,di->bsi", x, w1) + b1
    h = jax.nn.gelu(h, approximate=False)
    return jnp.einsum("bsi,id->bsd", h, w2) + b2


if __name__ == "__main__":
    # Small shapes: batch=2, seq=8, dim=128, mult=4 -> inner_dim=512.
    batch, seq, dim, mult = 2, 8, 128, 4
    inner = dim * mult

    key = jax.random.PRNGKey(0)
    kx, kw1, kb1, kw2, kb2 = jax.random.split(key, 5)

    x = jax.random.normal(kx, (batch, seq, dim), dtype=jnp.float32)
    # Deterministic synthetic parameters (scaled like typical Linear init).
    w1 = jax.random.normal(kw1, (dim, inner), dtype=jnp.float32) * (1.0 / jnp.sqrt(dim))
    b1 = jax.random.normal(kb1, (inner,), dtype=jnp.float32) * 0.01
    w2 = jax.random.normal(kw2, (inner, dim), dtype=jnp.float32) * (1.0 / jnp.sqrt(inner))
    b2 = jax.random.normal(kb2, (dim,), dtype=jnp.float32) * 0.01

    out = feed_forward(x, w1, b1, w2, b2)
    out = jax.block_until_ready(out)

    ref = reference_feed_forward(x, w1, b1, w2, b2)
    assert out.shape == (batch, seq, dim)
    assert jnp.allclose(out, ref, atol=1e-4, rtol=1e-4), "mismatch vs reference"

    print("KERNEL_OK")
</pallas_src>

<mosaic_0001>
module attributes {stable_mosaic.version = 11 : i64} {
  func.func @_ff_kernel(%arg0: i32, %arg1: i32, %arg2: memref<16x128xf32, #tpu.memory_space<vmem>>, %arg3: memref<128x512xf32, #tpu.memory_space<vmem>>, %arg4: memref<1x512xf32, #tpu.memory_space<vmem>>, %arg5: memref<512x128xf32, #tpu.memory_space<vmem>>, %arg6: memref<1x128xf32, #tpu.memory_space<vmem>>, %arg7: memref<16x128xf32, #tpu.memory_space<vmem>>, %arg8: memref<16x128xf32, #tpu.memory_space<vmem>>) attributes {dimension_semantics = [#tpu.dimension_semantics<parallel>, #tpu.dimension_semantics<arbitrary>], iteration_bounds = array<i64: 1, 1>, scalar_prefetch = 0 : i64, scratch_operands = 1 : i64, tpu.core_type = #tpu.core_type<tc>, window_params = [{transform_indices = @transform_0, window_bounds = array<i64: 16, 128>}, {transform_indices = @transform_1, window_bounds = array<i64: 128, 512>}, {transform_indices = @transform_2, window_bounds = array<i64: 1, 512>}, {transform_indices = @transform_3, window_bounds = array<i64: 512, 128>}, {pipeline_mode = #tpu.pipeline_mode<synchronous>, transform_indices = @transform_4, window_bounds = array<i64: 1, 128>}, {transform_indices = @transform_5, window_bounds = array<i64: 16, 128>}]} {
    %c0_i32 = arith.constant 0 : i32
    %0 = arith.cmpi eq, %arg1, %c0_i32 : i32
    %1 = arith.extui %0 : i1 to i32
    %c0_i32_0 = arith.constant 0 : i32
    %2 = arith.cmpi ne, %1, %c0_i32_0 : i32
    scf.if %2 {
      %cst_18 = arith.constant 0.000000e+00 : f32
      %25 = vector.broadcast %cst_18 : f32 to vector<16x128xf32>
      %c0_19 = arith.constant 0 : index
      %c0_20 = arith.constant 0 : index
      %26 = vector.load %arg8[%c0_19, %c0_20] : memref<16x128xf32, #tpu.memory_space<vmem>>, vector<16x128xf32>
      tpu.vector_store %arg8[%c0_19, %c0_20], %25 {strides = array<i32>} : memref<16x128xf32, #tpu.memory_space<vmem>>, vector<16x128xf32>,
    } else {
    }
    %c0 = arith.constant 0 : index
    %c0_1 = arith.constant 0 : index
    %3 = vector.load %arg2[%c0, %c0_1] : memref<16x128xf32, #tpu.memory_space<vmem>>, vector<16x128xf32>
    %c0_2 = arith.constant 0 : index
    %c0_3 = arith.constant 0 : index
    %4 = vector.load %arg3[%c0_2, %c0_3] : memref<128x512xf32, #tpu.memory_space<vmem>>, vector<128x512xf32>
    %cst = arith.constant dense<0.000000e+00> : vector<16x512xf32>
    %5 = tpu.matmul %3, %4, %cst {dimension_numbers = #tpu.dot_dimension_numbers<[1], [0], [0], [1], [0, 0, 1, 1], [], []>} : vector<16x128xf32>, vector<128x512xf32>, vector<16x512xf32> -> vector<16x512xf32>
    %c0_4 = arith.constant 0 : index
    %c0_5 = arith.constant 0 : index
    %6 = vector.load %arg4[%c0_4, %c0_5] : memref<1x512xf32, #tpu.memory_space<vmem>>, vector<1x512xf32>
    %7 = vector.broadcast %6 : vector<1x512xf32> to vector<16x512xf32>
    %8 = arith.addf %5, %7 : vector<16x512xf32>
    %cst_6 = arith.constant 5.000000e-01 : f32
    %9 = vector.broadcast %cst_6 : f32 to vector<16x512xf32>
    %10 = arith.mulf %9, %8 : vector<16x512xf32>
    %cst_7 = arith.constant 0.707106769 : f32
    %11 = vector.broadcast %cst_7 : f32 to vector<16x512xf32>
    %12 = arith.mulf %8, %11 : vector<16x512xf32>
    %13 = math.erf %12 : vector<16x512xf32>
    %cst_8 = arith.constant 1.000000e+00 : f32
    %14 = vector.broadcast %cst_8 : f32 to vector<16x512xf32>
    %15 = arith.addf %14, %13 : vector<16x512xf32>
    %16 = arith.mulf %10, %15 : vector<16x512xf32>
    %c0_9 = arith.constant 0 : index
    %c0_10 = arith.constant 0 : index
    %17 = vector.load %arg8[%c0_9, %c0_10] : memref<16x128xf32, #tpu.memory_space<vmem>>, vector<16x128xf32>
    %c0_11 = arith.constant 0 : index
    %c0_12 = arith.constant 0 : index
    %18 = vector.load %arg5[%c0_11, %c0_12] : memref<512x128xf32, #tpu.memory_space<vmem>>, vector<512x128xf32>
    %cst_13 = arith.constant dense<0.000000e+00> : vector<16x128xf32>
    %19 = tpu.matmul %16, %18, %cst_13 {dimension_numbers = #tpu.dot_dimension_numbers<[1], [0], [0], [1], [0, 0, 1, 1], [], []>} : vector<16x512xf32>, vector<512x128xf32>, vector<16x128xf32> -> vector<16x128xf32>
    %20 = arith.addf %17, %19 : vector<16x128xf32>
    %c0_14 = arith.constant 0 : index
    %c0_15 = arith.constant 0 : index
    %21 = vector.load %arg8[%c0_14, %c0_15] : memref<16x128xf32, #tpu.memory_space<vmem>>, vector<16x128xf32>
    tpu.vector_store %arg8[%c0_14, %c0_15], %20 {strides = array<i32>} : memref<16x128xf32, #tpu.memory_space<vmem>>, vector<16x128xf32>,
    %c0_i32_16 = arith.constant 0 : i32
    %22 = arith.cmpi eq, %arg1, %c0_i32_16 : i32
    %23 = arith.extui %22 : i1 to i32
    %c0_i32_17 = arith.constant 0 : i32
    %24 = arith.cmpi ne, %23, %c0_i32_17 : i32
    scf.if %24 {
      %c0_18 = arith.constant 0 : index
      %c0_19 = arith.constant 0 : index
      %25 = vector.load %arg8[%c0_18, %c0_19] : memref<16x128xf32, #tpu.memory_space<vmem>>, vector<16x128xf32>
      %c0_20 = arith.constant 0 : index
      %c0_21 = arith.constant 0 : index
      %26 = vector.load %arg6[%c0_20, %c0_21] : memref<1x128xf32, #tpu.memory_space<vmem>>, vector<1x128xf32>
      %27 = vector.broadcast %26 : vector<1x128xf32> to vector<16x128xf32>
      %28 = arith.addf %25, %27 : vector<16x128xf32>
      %c0_22 = arith.constant 0 : index
      %c0_23 = arith.constant 0 : index
      %29 = vector.load %arg7[%c0_22, %c0_23] : memref<16x128xf32, #tpu.memory_space<vmem>>, vector<16x128xf32>
      tpu.vector_store %arg7[%c0_22, %c0_23], %28 {strides = array<i32>} : memref<16x128xf32, #tpu.memory_space<vmem>>, vector<16x128xf32>,
    } else {
    }
    return
  }
  func.func @transform_0(%arg0: i32, %arg1: i32) -> (i32, i32) {
    %c0_i32 = arith.constant 0 : i32
    %c0_i32_0 = arith.constant 0 : i32
    return %arg0, %c0_i32 : i32, i32
  }
  func.func @transform_1(%arg0: i32, %arg1: i32) -> (i32, i32) {
    %c0_i32 = arith.constant 0 : i32
    %c0_i32_0 = arith.constant 0 : i32
    return %c0_i32, %arg1 : i32, i32
  }
  func.func @transform_2(%arg0: i32, %arg1: i32) -> (i32, i32) {
    %c0_i32 = arith.constant 0 : i32
    %c0_i32_0 = arith.constant 0 : i32
    return %c0_i32, %arg1 : i32, i32
  }
  func.func @transform_3(%arg0: i32, %arg1: i32) -> (i32, i32) {
    %c0_i32 = arith.constant 0 : i32
    %c0_i32_0 = arith.constant 0 : i32
    return %arg1, %c0_i32 : i32, i32
  }
  func.func @transform_4(%arg0: i32, %arg1: i32) -> (i32, i32) {
    %c0_i32 = arith.constant 0 : i32
    %c0_i32_0 = arith.constant 0 : i32
    %c0_i32_1 = arith.constant 0 : i32
    return %c0_i32, %c0_i32_0 : i32, i32
  }
  func.func @transform_5(%arg0: i32, %arg1: i32) -> (i32, i32) {
    %c0_i32 = arith.constant 0 : i32
    %c0_i32_0 = arith.constant 0 : i32
    return %arg0, %c0_i32 : i32, i32
  }
}

</mosaic_0001>

<bundles_post_ra>
// kernel: tpu_custom_call.1
= control target key start
LH: loop header
LB: loop body
LE: loop exit
PB: predicated region body
PF: predicated region fallthrough
CT: control target
= control target key end

     0   :  { %10 = vsyncpa [#allocation4], 0  ;;  %s1034_s0 = inlined_call_operand.hbm [shape: f32[16,128], index: 0, kind: input, shape index: {}]   ;;  %s1035_s1 = inlined_call_operand.hbm [shape: f32[128,512], index: 1, kind: input, shape index: {}]   ;;  %s1036_s2 = inlined_call_operand.vmem [shape: f32[1,512], index: 2, kind: input, shape index: {}]   ;;  %s1037_s3 = inlined_call_operand.hbm [shape: f32[512,128], index: 3, kind: input, shape index: {}]   ;;  %s1038_s4 = inlined_call_operand.vmem [shape: f32[1,128], index: 4, kind: input, shape index: {}]   ;;  %s1039_s5 = inlined_call_operand.hbm [shape: f32[16,128], index: 5, kind: output, shape index: {}]  }
   0x1   :  { %11 = vsyncpa [#allocation7], 0 }
   0x2   :  { %12 = vsyncpa [#allocation5], 0  ;;  %s928_s18 = smov [#allocation6]   ;;  %s834_s22 = scalar_lea.hbm %s1035_s1, 8192 }
   0x3   :  { %s30_s19 = sshll.u32 %s928_s18, 4  ;;  %p835_p0 = scmp.ne.s32.totalorder %s1035_s1, %s834_s22  ;;  %s31_s19 = int_to_ptr.vmem [resolvable:$true] %s30_s19 }
   0x4   :  { %p838_p1 = scmp.lt.u32.totalorder %s834_s22, %s1035_s1 }
   0x6   :  { %p840_p2 = pnand %p838_p1, %p835_p0 }
   0x8   :  { %843 = shalt.err (!%p840_p2)
}
   0x9   :  { %s844_s27 = scalar_lea.vmem %s31_s19, 8192  ;;  %p849_p4 = scmp.lt.s32.totalorder %s31_s19, %s31_s19 }
   0xa   :  { %p845_p3 = scmp.ne.s32.totalorder %s31_s19, %s844_s27  ;;  %p850_p5 = scmp.lt.s32.totalorder %s844_s27, %s844_s27 }
   0xc   :  { %p851_p6 = por %p850_p5, %p849_p4 }
   0xe   :  { %p852_p7 = pnand %p851_p6, %p845_p3 }
  0x10   :  { %855 = shalt.err (!%p852_p7)
}
  0x11   :  { %s929_s28 = smov 512   ;;  %s930_s29 = smov 32  }
  0x12   :  { %36 = dma.hbm_to_vmem [thread:$0]  %s1035_s1, 8192, %s31_s19, [#allocation7], %s929_s28, %s929_s28, %s930_s29  }
  0x13   :  { %s931_s7 = smov [#allocation3]   ;;  %s856_s11 = scalar_lea.hbm %s1034_s0, 256 }
  0x14   :  { %s18_s8 = sshll.u32 %s931_s7, 4  ;;  %p857_p8 = scmp.ne.s32.totalorder %s1034_s0, %s856_s11  ;;  %s19_s8 = int_to_ptr.vmem [resolvable:$true] %s18_s8 }
  0x15   :  { %p860_p9 = scmp.lt.u32.totalorder %s856_s11, %s1034_s0 }
  0x17   :  { %p862_p10 = pnand %p860_p9, %p857_p8 }
  0x19   :  { %865 = shalt.err (!%p862_p10)
}
  0x1a   :  { %s866_s16 = scalar_lea.vmem %s19_s8, 256  ;;  %p871_p12 = scmp.lt.s32.totalorder %s19_s8, %s19_s8 }
  0x1b   :  { %p867_p11 = scmp.ne.s32.totalorder %s19_s8, %s866_s16  ;;  %p872_p13 = scmp.lt.s32.totalorder %s866_s16, %s866_s16 }
  0x1d   :  { %p873_p0 = por %p872_p13, %p871_p12 }
  0x1f   :  { %p874_p1 = pnand %p873_p0, %p867_p11 }
  0x21   :  { %877 = shalt.err (!%p874_p1)
}
  0x22   :  { %s932_s1 = smov 128   ;;  %s933_s17 = smov 8  }
  0x23   :  { %24 = dma.hbm_to_vmem [thread:$0]  %s1034_s0, 256, %s19_s8, [#allocation4], %s932_s1, %s932_s1, %s933_s17  }
  0x24   :  { %s934_s20 = smov [#allocation8]   ;;  %s878_s24 = scalar_lea.hbm %s1037_s3, 8192 }
  0x25   :  { %s44_s21 = sshll.u32 %s934_s20, 4  ;;  %p879_p2 = scmp.ne.s32.totalorder %s1037_s3, %s878_s24  ;;  %s45_s21 = int_to_ptr.vmem [resolvable:$true] %s44_s21 }
  0x26   :  { %p882_p3 = scmp.lt.u32.totalorder %s878_s24, %s1037_s3 }
  0x28   :  { %p884_p4 = pnand %p882_p3, %p879_p2 }
  0x2a   :  { %887 = shalt.err (!%p884_p4)
}
  0x2b   :  { %s888_s29 = scalar_lea.vmem %s45_s21, 8192  ;;  %p893_p6 = scmp.lt.s32.totalorder %s45_s21, %s45_s21 }
  0x2c   :  { %p889_p5 = scmp.ne.s32.totalorder %s45_s21, %s888_s29  ;;  %p894_p7 = scmp.lt.s32.totalorder %s888_s29, %s888_s29 }
  0x2e   :  { %p895_p8 = por %p894_p7, %p893_p6 }
  0x30   :  { %p896_p9 = pnand %p895_p8, %p889_p5 }
  0x32   :  { %899 = shalt.err (!%p896_p9)
}
  0x33   :  { %50 = dma.hbm_to_vmem [thread:$0]  %s1037_s3, 8192, %s45_s21, [#allocation7], %s932_s1, %s932_s1, %s933_s17  }
  0x34   :  { %922 = dma.done.wait [#allocation4], 256  }
  0x35   :  { %923 = vsyncadd [#allocation4], 4294967040 }
  0x36   :  { %924 = dma.done.wait [#allocation7], 16384  }
  0x37   :  { %925 = vsyncadd [#allocation7], 4294950912  ;;  %v935_v0 = vmov 0.0   ;;  %v71_v1 = vld [vmem:[#allocation6 + $0x8] sm:$0xff]  ;;  %v73_v3 = vld [vmem:[#allocation6 + $0x18] sm:$0xff]  ;;  %s936_s8 = smov [#allocation9]  }
  0x38   :  { %220 = vmatprep.mubr.f32.mxu0 %v935_v0  ;;  %297 = vmatprep.mubr.f32.mxu1 %v935_v0  ;;  %v75_v2 = vld [vmem:[#allocation6 + $0x28] sm:$0xff]  ;;  %v77_v5 = vld [vmem:[#allocation6 + $0x38] sm:$0xff]  ;;  %v70_v6 = vld [vmem:[#allocation6] sm:$0xff]  ;;  %s591_s9 = sshll.u32 %s936_s8, 4  ;;  %s592_s9 = int_to_ptr.vmem [resolvable:$true] %s591_s9 }
  0x39   :  { %v681_v4 = vpack.c.bf16 %v75_v2, %v71_v1  ;;  %v74_v7 = vld [vmem:[#allocation6 + $0x20] sm:$0xff]  ;;  %v713_v8 = vpack.c.bf16 %v77_v5, %v73_v3  ;;  %v72_v10 = vld [vmem:[#allocation6 + $0x10] sm:$0xff]  ;;  %v79_v12 = vld [vmem:[#allocation6 + $0x48] sm:$0xff]  ;;  %s900_s10 = scalar_lea.vmem %s592_s9, 256  ;;  %p905_p11 = scmp.lt.s32.totalorder %s592_s9, %s592_s9 }
  0x3a   :  { %v683_v9 = vpack.c.bf16 %v74_v7, %v70_v6  ;;  %v76_v11 = vld [vmem:[#allocation6 + $0x30] sm:$0xff]  ;;  %v83_v14 = vld [vmem:[#allocation6 + $0x68] sm:$0xff]  ;;  %v81_v15 = vld [vmem:[#allocation6 + $0x58] sm:$0xff]  ;;  %p901_p10 = scmp.ne.s32.totalorder %s592_s9, %s900_s10  ;;  %p906_p12 = scmp.lt.s32.totalorder %s900_s10, %s900_s10 }
  0x3b   :  { %682 = vmatprep.subr.bf16.mxu0 %v681_v4  ;;  %v715_v13 = vpack.c.bf16 %v76_v11, %v72_v10  ;;  %v85_v16 = vld [vmem:[#allocation6 + $0x78] sm:$0xff]  ;;  %714 = vmatprep.subr.bf16.mxu1 %v713_v8  ;;  %v685_v17 = vpack.c.bf16 %v83_v14, %v79_v12  ;;  %v78_v19 = vld [vmem:[#allocation6 + $0x40] sm:$0xff]  ;;  %v80_v21 = vld [vmem:[#allocation6 + $0x50] sm:$0xff] }
  0x3c   :  { %684 = vmatpush1.bf16.msra.mxu0 %v683_v9  ;;  %v717_v18 = vpack.c.bf16 %v85_v16, %v81_v15  ;;  %v82_v20 = vld [vmem:[#allocation6 + $0x60] sm:$0xff]  ;;  %v84_v23 = vld [vmem:[#allocation6 + $0x70] sm:$0xff]  ;;  %v87_v24 = vld [vmem:[#allocation6 + $0x88] sm:$0xff]  ;;  %p907_p13 = por %p906_p12, %p905_p11 }
  0x3d   :  { %716 = vmatpush1.bf16.msra.mxu1 %v715_v13  ;;  %v687_v22 = vpack.c.bf16 %v82_v20, %v78_v19  ;;  %v91_v25 = vld [vmem:[#allocation6 + $0xa8] sm:$0xff]  ;;  %686 = vmatprep.subr.bf16.mxu0 %v685_v17  ;;  %v719_v26 = vpack.c.bf16 %v84_v23, %v80_v21  ;;  %v89_v28 = vld [vmem:[#allocation6 + $0x98] sm:$0xff]  ;;  %v86_v30 = vld [vmem:[#allocation6 + $0x80] sm:$0xff] }
  0x3e   :  { %718 = vmatprep.subr.bf16.mxu1 %v717_v18  ;;  %v689_v27 = vpack.c.bf16 %v91_v25, %v87_v24  ;;  %v93_v29 = vld [vmem:[#allocation6 + $0xb8] sm:$0xff]  ;;  %v90_v32 = vld [vmem:[#allocation6 + $0xa0] sm:$0xff]  ;;  %v88_v33 = vld [vmem:[#allocation6 + $0x90] sm:$0xff]  ;;  %p908_p0 = pnand %p907_p13, %p901_p10 }
  0x3f   :  { %v721_v31 = vpack.c.bf16 %v93_v29, %v89_v28  ;;  %v92_v34 = vld [vmem:[#allocation6 + $0xb0] sm:$0xff]  ;;  %v691_v35 = vpack.c.bf16 %v90_v32, %v86_v30  ;;  %v95_v36 = vld [vmem:[#allocation6 + $0xc8] sm:$0xff]  ;;  %v97_v38 = vld [vmem:[#allocation6 + $0xd8] sm:$0xff] }
  0x40   :  { %688 = vmatpush1.bf16.msra.mxu0 %v687_v22  ;;  %v99_v37 = vld [vmem:[#allocation6 + $0xe8] sm:$0xff]  ;;  %v723_v39 = vpack.c.bf16 %v92_v34, %v88_v33  ;;  %v101_v41 = vld [vmem:[#allocation6 + $0xf8] sm:$0xff]  ;;  %v94_v42 = vld [vmem:[#allocation6 + $0xc0] sm:$0xff] }
  0x41   :  { %720 = vmatpush1.bf16.msra.mxu1 %v719_v26  ;;  %690 = vmatprep.subr.bf16.mxu0 %v689_v27  ;;  %v693_v40 = vpack.c.bf16 %v99_v37, %v95_v36  ;;  %v98_v43 = vld [vmem:[#allocation6 + $0xe0] sm:$0xff]  ;;  %v725_v44 = vpack.c.bf16 %v101_v41, %v97_v38  ;;  %v96_v45 = vld [vmem:[#allocation6 + $0xd0] sm:$0xff]  ;;  %v103_v47 = vld [vmem:[#allocation6 + $0x108] sm:$0xff] }
  0x42   :  { %722 = vmatprep.subr.bf16.mxu1 %v721_v31  ;;  %v100_v46 = vld [vmem:[#allocation6 + $0xf0] sm:$0xff]  ;;  %v107_v48 = vld [vmem:[#allocation6 + $0x128] sm:$0xff]  ;;  %v105_v49 = vld [vmem:[#allocation6 + $0x118] sm:$0xff]  ;;  %v695_v51 = vpack.c.bf16 %v98_v43, %v94_v42 }
  0x43   :  { %v109_v50 = vld [vmem:[#allocation6 + $0x138] sm:$0xff]  ;;  %v727_v52 = vpack.c.bf16 %v100_v46, %v96_v45  ;;  %v697_v53 = vpack.c.bf16 %v107_v48, %v103_v47  ;;  %v102_v54 = vld [vmem:[#allocation6 + $0x100] sm:$0xff]  ;;  %v104_v56 = vld [vmem:[#allocation6 + $0x110] sm:$0xff] }
  0x44   :  { %692 = vmatpush1.bf16.msra.mxu0 %v691_v35  ;;  %v106_v55 = vld [vmem:[#allocation6 + $0x120] sm:$0xff]  ;;  %v729_v57 = vpack.c.bf16 %v109_v50, %v105_v49  ;;  %v108_v58 = vld [vmem:[#allocation6 + $0x130] sm:$0xff]  ;;  %v111_v59 = vld [vmem:[#allocation6 + $0x148] sm:$0xff] }
  0x45   :  { %724 = vmatpush1.bf16.msra.mxu1 %v723_v39  ;;  %694 = vmatprep.subr.bf16.mxu0 %v693_v40  ;;  %v115_v60 = vld [vmem:[#allocation6 + $0x168] sm:$0xff]  ;;  %v113_v61 = vld [vmem:[#allocation6 + $0x158] sm:$0xff]  ;;  %v699_v63 = vpack.c.bf16 %v106_v55, %v102_v54  ;;  %v731_v1 = vpack.c.bf16 %v108_v58, %v104_v56  ;;  %v110_v3 = vld [vmem:[#allocation6 + $0x140] sm:$0xff] }
  0x46   :  { %726 = vmatprep.subr.bf16.mxu1 %v725_v44  ;;  %v117_v62 = vld [vmem:[#allocation6 + $0x178] sm:$0xff]  ;;  %v701_v2 = vpack.c.bf16 %v115_v60, %v111_v59  ;;  %v114_v4 = vld [vmem:[#allocation6 + $0x160] sm:$0xff]  ;;  %v112_v5 = vld [vmem:[#allocation6 + $0x150] sm:$0xff] }
  0x47   :  { %v733_v6 = vpack.c.bf16 %v117_v62, %v113_v61  ;;  %v116_v7 = vld [vmem:[#allocation6 + $0x170] sm:$0xff]  ;;  %v119_v8 = vld [vmem:[#allocation6 + $0x188] sm:$0xff]  ;;  %v121_v10 = vld [vmem:[#allocation6 + $0x198] sm:$0xff]  ;;  %v703_v12 = vpack.c.bf16 %v114_v4, %v110_v3 }
  0x48   :  { %696 = vmatpush1.bf16.msra.mxu0 %v695_v51  ;;  %v123_v9 = vld [vmem:[#allocation6 + $0x1a8] sm:$0xff]  ;;  %v125_v11 = vld [vmem:[#allocation6 + $0x1b8] sm:$0xff]  ;;  %v735_v13 = vpack.c.bf16 %v116_v7, %v112_v5  ;;  %v118_v15 = vld [vmem:[#allocation6 + $0x180] sm:$0xff] }
  0x49   :  { %728 = vmatpush1.bf16.msra.mxu1 %v727_v52  ;;  %698 = vmatprep.subr.bf16.mxu0 %v697_v53  ;;  %v705_v14 = vpack.c.bf16 %v123_v9, %v119_v8  ;;  %v122_v16 = vld [vmem:[#allocation6 + $0x1a0] sm:$0xff]  ;;  %v120_v17 = vld [vmem:[#allocation6 + $0x190] sm:$0xff]  ;;  %v737_v18 = vpack.c.bf16 %v125_v11, %v121_v10  ;;  %v127_v20 = vld [vmem:[#allocation6 + $0x1c8] sm:$0xff] }
  0x4a   :  { %730 = vmatprep.subr.bf16.mxu1 %v729_v57  ;;  %v124_v19 = vld [vmem:[#allocation6 + $0x1b0] sm:$0xff]  ;;  %v131_v21 = vld [vmem:[#allocation6 + $0x1e8] sm:$0xff]  ;;  %v129_v22 = vld [vmem:[#allocation6 + $0x1d8] sm:$0xff]  ;;  %v707_v24 = vpack.c.bf16 %v122_v16, %v118_v15 }
  0x4b   :  { %v133_v23 = vld [vmem:[#allocation6 + $0x1f8] sm:$0xff]  ;;  %v739_v25 = vpack.c.bf16 %v124_v19, %v120_v17  ;;  %v709_v26 = vpack.c.bf16 %v131_v21, %v127_v20  ;;  %v126_v27 = vld [vmem:[#allocation6 + $0x1c0] sm:$0xff]  ;;  %v128_v29 = vld [vmem:[#allocation6 + $0x1d0] sm:$0xff] }
  0x4c   :  { %700 = vmatpush1.bf16.msra.mxu0 %v699_v63  ;;  %v130_v28 = vld [vmem:[#allocation6 + $0x1e0] sm:$0xff]  ;;  %v741_v30 = vpack.c.bf16 %v133_v23, %v129_v22  ;;  %v132_v31 = vld [vmem:[#allocation6 + $0x1f0] sm:$0xff]  ;;  %v369_v33 = vld [vmem:[#allocation8 + $0x88] sm:$0xff] }
  0x4d   :  { %732 = vmatpush1.bf16.msra.mxu1 %v731_v1  ;;  %702 = vmatprep.subr.bf16.mxu0 %v701_v2  ;;  %v368_v32 = vld [vmem:[#allocation8 + $0x80] sm:$0xff]  ;;  %v401_v35 = vld [vmem:[#allocation8 + $0x188] sm:$0xff]  ;;  %v711_v36 = vpack.c.bf16 %v130_v28, %v126_v27  ;;  %v743_v37 = vpack.c.bf16 %v132_v31, %v128_v29  ;;  %v370_v44 = vld [vmem:[#allocation8 + $0x90] sm:$0xff] }
  0x4e   :  { %734 = vmatprep.subr.bf16.mxu1 %v733_v6  ;;  %v400_v34 = vld [vmem:[#allocation8 + $0x180] sm:$0xff]  ;;  %v745_v38 = vpack.c.bf16 %v369_v33, %v368_v32  ;;  %v353_v41 = vld [vmem:[#allocation8 + $0x8] sm:$0xff]  ;;  %v371_v45 = vld [vmem:[#allocation8 + $0x98] sm:$0xff] }
  0x4f   :  { %v777_v39 = vpack.c.bf16 %v401_v35, %v400_v34  ;;  %v352_v40 = vld [vmem:[#allocation8] sm:$0xff]  ;;  %v385_v43 = vld [vmem:[#allocation8 + $0x108] sm:$0xff]  ;;  %v68_v46 = vld [vmem:[#allocation3] sm:$0xff]  ;;  %v749_v51 = vpack.c.bf16 %v371_v45, %v370_v44 }
  0x50   :  { %704 = vmatpush1.bf16.msra.mxu0 %v703_v12  ;;  %v384_v42 = vld [vmem:[#allocation8 + $0x100] sm:$0xff]  ;;  %v402_v47 = vld [vmem:[#allocation8 + $0x190] sm:$0xff]  ;;  %v403_v48 = vld [vmem:[#allocation8 + $0x198] sm:$0xff]  ;;  %v747_v49 = vpack.c.bf16 %v353_v41, %v352_v40 }
  0x51   :  { %736 = vmatpush1.bf16.msra.mxu1 %v735_v13  ;;  %706 = vmatprep.subr.bf16.mxu0 %v705_v14  ;;  %v779_v50 = vpack.c.bf16 %v385_v43, %v384_v42  ;;  %v354_v52 = vld [vmem:[#allocation8 + $0x10] sm:$0xff]  ;;  %v355_v53 = vld [vmem:[#allocation8 + $0x18] sm:$0xff]  ;;  %v781_v55 = vpack.c.bf16 %v403_v48, %v402_v47  ;;  %v372_v57 = vld [vmem:[#allocation8 + $0xa0] sm:$0xff] }
  0x52   :  { %738 = vmatprep.subr.bf16.mxu1 %v737_v18  ;;  %v386_v54 = vld [vmem:[#allocation8 + $0x110] sm:$0xff]  ;;  %v387_v56 = vld [vmem:[#allocation8 + $0x118] sm:$0xff]  ;;  %v373_v58 = vld [vmem:[#allocation8 + $0xa8] sm:$0xff]  ;;  %v751_v62 = vpack.c.bf16 %v355_v53, %v354_v52 }
  0x53   :  { %v69_v59 = vld [vmem:[#allocation3 + $0x8] sm:$0xff]  ;;  %v404_v60 = vld [vmem:[#allocation8 + $0x1a0] sm:$0xff]  ;;  %v405_v61 = vld [vmem:[#allocation8 + $0x1a8] sm:$0xff]  ;;  %v783_v63 = vpack.c.bf16 %v387_v56, %v386_v54  ;;  %v753_v1 = vpack.c.bf16 %v373_v58, %v372_v57 }
  0x54   :  { %708 = vmatpush1.bf16.msra.mxu0 %v707_v24  ;;  %v356_v2 = vld [vmem:[#allocation8 + $0x20] sm:$0xff]  ;;  %v357_v3 = vld [vmem:[#allocation8 + $0x28] sm:$0xff]  ;;  %v785_v4 = vpack.c.bf16 %v405_v61, %v404_v60  ;;  %v375_v9 = vld [vmem:[#allocation8 + $0xb8] sm:$0xff] }
  0x55   :  { %740 = vmatpush1.bf16.msra.mxu1 %v739_v25  ;;  %710 = vmatprep.subr.bf16.mxu0 %v709_v26  ;;  %v388_v5 = vld [vmem:[#allocation8 + $0x120] sm:$0xff]  ;;  %v389_v6 = vld [vmem:[#allocation8 + $0x128] sm:$0xff]  ;;  %v755_v7 = vpack.c.bf16 %v357_v3, %v356_v2  ;;  %v406_v10 = vld [vmem:[#allocation8 + $0x1b0] sm:$0xff] }
  0x56   :  { %742 = vmatprep.subr.bf16.mxu1 %v741_v30  ;;  %v787_v8 = vpack.c.bf16 %v389_v6, %v388_v5  ;;  %v407_v12 = vld [vmem:[#allocation8 + $0x1b8] sm:$0xff]  ;;  %v358_v13 = vld [vmem:[#allocation8 + $0x30] sm:$0xff]  ;;  %v376_v20 = vld [vmem:[#allocation8 + $0xc0] sm:$0xff]  ;;  %v136_v5 = vlaneseq }
  0x57   :  { %v359_v14 = vld [vmem:[#allocation8 + $0x38] sm:$0xff]  ;;  %v789_v15 = vpack.c.bf16 %v407_v12, %v406_v10  ;;  %v390_v17 = vld [vmem:[#allocation8 + $0x130] sm:$0xff]  ;;  %v377_v21 = vld [vmem:[#allocation8 + $0xc8] sm:$0xff] }
  0x58   :  { %712 = vmatpush1.bf16.msra.mxu0 %v711_v36  ;;  %v759_v16 = vpack.c.bf16 %v359_v14, %v358_v13  ;;  %v391_v18 = vld [vmem:[#allocation8 + $0x138] sm:$0xff]  ;;  %v408_v22 = vld [vmem:[#allocation8 + $0x1c0] sm:$0xff]  ;;  %v761_v23 = vpack.c.bf16 %v377_v21, %v376_v20  ;;  %v409_v24 = vld [vmem:[#allocation8 + $0x1c8] sm:$0xff]  ;;  %v137_v6 = vshrl.u32 %v136_v5, 7 }
  0x59   :  { %744 = vmatpush1.bf16.msra.mxu1 %v743_v37  ;;  %746 = vmatprep.subr.bf16.mxu0 %v745_v38  ;;  %v791_v19 = vpack.c.bf16 %v391_v18, %v390_v17  ;;  %v360_v25 = vld [vmem:[#allocation8 + $0x40] sm:$0xff]  ;;  %v361_v26 = vld [vmem:[#allocation8 + $0x48] sm:$0xff]  ;;  %v793_v27 = vpack.c.bf16 %v409_v24, %v408_v22  ;;  %v378_v32 = vld [vmem:[#allocation8 + $0xd0] sm:$0xff] }
  0x5a   :  { %778 = vmatprep.subr.bf16.mxu1 %v777_v39  ;;  %v763_v28 = vpack.c.bf16 %v361_v26, %v360_v25  ;;  %v392_v29 = vld [vmem:[#allocation8 + $0x140] sm:$0xff]  ;;  %v393_v30 = vld [vmem:[#allocation8 + $0x148] sm:$0xff]  ;;  %v379_v33 = vld [vmem:[#allocation8 + $0xd8] sm:$0xff]  ;;  %v150_v10 = vsub.s32 3, %v137_v6 }
  0x5b   :  { %221 = vmatmul.mubr.f32.vlgmr.msra.gmra.mrb[0].mxu0 %v68_v46  ;;  %v795_v31 = vpack.c.bf16 %v393_v30, %v392_v29  ;;  %v410_v34 = vld [vmem:[#allocation8 + $0x1d0] sm:$0xff]  ;;  %v765_v35 = vpack.c.bf16 %v379_v33, %v378_v32  ;;  %v411_v36 = vld [vmem:[#allocation8 + $0x1d8] sm:$0xff]  ;;  %v380_v44 = vld [vmem:[#allocation8 + $0xe0] sm:$0xff] }
  0x5c   :  { %298 = vmatmul.mubr.f32.vlgmr.msra.gmra.mrb[0].mxu1 %v68_v46  ;;  %226 = vmatprep.mubr.f32.mxu0 %v935_v0  ;;  %v362_v37 = vld [vmem:[#allocation8 + $0x50] sm:$0xff]  ;;  %v363_v38 = vld [vmem:[#allocation8 + $0x58] sm:$0xff]  ;;  %v797_v39 = vpack.c.bf16 %v411_v36, %v410_v34  ;;  %v381_v45 = vld [vmem:[#allocation8 + $0xe8] sm:$0xff] }
  0x5d   :  { %303 = vmatprep.mubr.f32.mxu1 %v935_v0  ;;  %748 = vmatpush3.bf16.msra.mxu0 %v747_v49  ;;  %v374_v0 = vld [vmem:[#allocation8 + $0xb0] sm:$0xff]  ;;  %v767_v40 = vpack.c.bf16 %v363_v38, %v362_v37  ;;  %v395_v42 = vld [vmem:[#allocation8 + $0x158] sm:$0xff]  ;;  %v412_v46 = vld [vmem:[#allocation8 + $0x1e0] sm:$0xff]  ;;  %v769_v47 = vpack.c.bf16 %v381_v45, %v380_v44 }
  0x5e   :  { %780 = vmatpush3.bf16.msra.mxu1 %v779_v50  ;;  %750 = vmatprep.subr.bf16.mxu0 %v749_v51  ;;  %v757_v11 = vpack.c.bf16 %v375_v9, %v374_v0  ;;  %v394_v41 = vld [vmem:[#allocation8 + $0x150] sm:$0xff]  ;;  %v413_v48 = vld [vmem:[#allocation8 + $0x1e8] sm:$0xff]  ;;  %v364_v49 = vld [vmem:[#allocation8 + $0x60] sm:$0xff]  ;;  %v146_v0 = vsub.s32 2, %v137_v6  ;;  %v142_v9 = vsub.s32 1, %v137_v6 }
  0x5f   :  { %227 = vmatmul.mubr.f32.gmra.mrb[2].mxu0 %v69_v59  ;;  %782 = vmatprep.subr.bf16.mxu1 %v781_v55  ;;  %v799_v43 = vpack.c.bf16 %v395_v42, %v394_v41  ;;  %v365_v50 = vld [vmem:[#allocation8 + $0x68] sm:$0xff]  ;;  %v801_v51 = vpack.c.bf16 %v413_v48, %v412_v46  ;;  %v396_v53 = vld [vmem:[#allocation8 + $0x160] sm:$0xff]  ;;  %v382_v56 = vld [vmem:[#allocation8 + $0xf0] sm:$0xff] }
  0x60   :  { %304 = vmatmul.mubr.f32.gmra.mrb[2].mxu1 %v69_v59  ;;  %v771_v52 = vpack.c.bf16 %v365_v50, %v364_v49  ;;  %v397_v54 = vld [vmem:[#allocation8 + $0x168] sm:$0xff]  ;;  %v383_v57 = vld [vmem:[#allocation8 + $0xf8] sm:$0xff]  ;;  %v414_v58 = vld [vmem:[#allocation8 + $0x1f0] sm:$0xff] }
  0x61   :  { %752 = vmatpush3.bf16.msra.mxu0 %v751_v62  ;;  %v803_v55 = vpack.c.bf16 %v397_v54, %v396_v53  ;;  %v773_v59 = vpack.c.bf16 %v383_v57, %v382_v56  ;;  %v415_v60 = vld [vmem:[#allocation8 + $0x1f8] sm:$0xff]  ;;  %v366_v61 = vld [vmem:[#allocation8 + $0x70] sm:$0xff] }
  0x62   :  { %784 = vmatpush3.bf16.msra.mxu1 %v783_v63  ;;  %754 = vmatprep.subr.bf16.mxu0 %v753_v1  ;;  %v367_v62 = vld [vmem:[#allocation8 + $0x78] sm:$0xff]  ;;  %v805_v63 = vpack.c.bf16 %v415_v60, %v414_v58  ;;  %v398_v2 = vld [vmem:[#allocation8 + $0x170] sm:$0xff] }
  0x63   :  { %786 = vmatprep.subr.bf16.mxu1 %v785_v4  ;;  %v775_v1 = vpack.c.bf16 %v367_v62, %v366_v61  ;;  %v399_v3 = vld [vmem:[#allocation8 + $0x178] sm:$0xff] }
  0x64   :  { %v807_v4 = vpack.c.bf16 %v399_v3, %v398_v2 }
  0x65   :  { %756 = vmatpush3.bf16.msra.mxu0 %v755_v7  ;;  %v138_v7 = vsub.s32 0, %v137_v6 }
  0x66   :  { %788 = vmatpush3.bf16.msra.mxu1 %v787_v8  ;;  %758 = vmatprep.subr.bf16.mxu0 %v757_v11  ;;  %v134_v8 = vld [vmem:[%s1036_s2] sm:$0xf] }
  0x67   :  { %790 = vmatprep.subr.bf16.mxu1 %v789_v15  ;;  %v139_v11 = vrot.slane %v134_v8, %v138_v7  ;;  %v147_v12 = vrot.slane %v134_v8, %v146_v0  ;;  %v143_v13 = vrot.slane %v134_v8, %v142_v9  ;;  %v151_v14 = vrot.slane %v134_v8, %v150_v10 }
  0x69   :  { %760 = vmatpush3.bf16.msra.mxu0 %v759_v16 }
  0x6a   :  { %792 = vmatpush3.bf16.msra.mxu1 %v791_v19  ;;  %762 = vmatprep.subr.bf16.mxu0 %v761_v23 }
  0x6b   :  { %794 = vmatprep.subr.bf16.mxu1 %v793_v27 }
  0x6d   :  { %764 = vmatpush3.bf16.msra.mxu0 %v763_v28 }
  0x6e   :  { %796 = vmatpush3.bf16.msra.mxu1 %v795_v31  ;;  %766 = vmatprep.subr.bf16.mxu0 %v765_v35 }
  0x6f   :  { %798 = vmatprep.subr.bf16.mxu1 %v797_v39 }
  0x71   :  { %768 = vmatpush3.bf16.msra.mxu0 %v767_v40 }
  0x72   :  { %800 = vmatpush3.bf16.msra.mxu1 %v799_v43  ;;  %770 = vmatprep.subr.bf16.mxu0 %v769_v47 }
  0x73   :  { %802 = vmatprep.subr.bf16.mxu1 %v801_v51 }
  0x75   :  { %772 = vmatpush3.bf16.msra.mxu0 %v771_v52 }
  0x76   :  { %804 = vmatpush3.bf16.msra.mxu1 %v803_v55  ;;  %774 = vmatprep.subr.bf16.mxu0 %v773_v59 }
  0x77   :  { %806 = vmatprep.subr.bf16.mxu1 %v805_v63 }
  0x79   :  { %776 = vmatpush3.bf16.msra.mxu0 %v775_v1 }
  0x7a   :  { %808 = vmatpush3.bf16.msra.mxu1 %v807_v4 }
 0x12e   :  { %v222_v15 = vpop.f32.mrb[0].mxu0 }
 0x12f   :  { %v223_v16 = vadd.f32 %v222_v15, %v139_v11  ;;  %v299_v17 = vpop.f32.mrb[0].mxu1  ;;  %v224_v18 = vpop.f32.mrb[1].mxu0 }
 0x130   :  { %v300_v19 = vadd.f32 %v299_v17, %v147_v12  ;;  %v225_v20 = vadd.f32 %v224_v18, %v143_v13  ;;  %v301_v21 = vpop.f32.mrb[1].mxu1 }
 0x131   :  { %v318_v22 = vmul.f32 0.70710677, %v223_v16  ;;  %v302_v23 = vadd.f32 %v301_v21, %v151_v14  ;;  %v310_v47 = vmul.f32 0.5, %v223_v16 }
 0x132   :  { %v320_v24 = vmul.f32 0.70710677, %v300_v19  ;;  %v319_v25 = vmul.f32 0.70710677, %v225_v20  ;;  %v228_v27 = vpop.f32.mrb[2].mxu0  ;;  %v311_v45 = vmul.f32 0.5, %v225_v20 }
 0x133   :  { %818 = verf.f32 %v318_v22  ;;  %v321_v26 = vmul.f32 0.70710677, %v302_v23  ;;  %v305_v28 = vpop.f32.mrb[2].mxu1  ;;  %v229_v29 = vadd.f32 %v228_v27, %v139_v11  ;;  %v230_v31 = vpop.f32.mrb[3].mxu0  ;;  %v313_v48 = vmul.f32 0.5, %v302_v23 }
 0x134   :  { %820 = verf.f32 %v320_v24  ;;  %v306_v30 = vadd.f32 %v305_v28, %v147_v12  ;;  %v307_v32 = vpop.f32.mrb[3].mxu1  ;;  %v231_v33 = vadd.f32 %v230_v31, %v143_v13  ;;  %v312_v51 = vmul.f32 0.5, %v300_v19  ;;  %v604_v13 = vld [vmem:[%s1038_s4] ss:$0 sm:$0xff] }
 0x135   :  { %822 = verf.f32 %v319_v25  ;;  %v308_v34 = vadd.f32 %v307_v32, %v151_v14  ;;  %v322_v35 = vmul.f32 0.70710677, %v229_v29  ;;  %v314_v63 = vmul.f32 0.5, %v229_v29 }
 0x136   :  { %824 = verf.f32 %v321_v26  ;;  %v324_v36 = vmul.f32 0.70710677, %v306_v30  ;;  %v323_v37 = vmul.f32 0.70710677, %v231_v33  ;;  %v315_v61 = vmul.f32 0.5, %v231_v33 }
 0x137   :  { %826 = verf.f32 %v322_v35  ;;  %v325_v38 = vmul.f32 0.70710677, %v308_v34  ;;  %v317_v1 = vmul.f32 0.5, %v308_v34  ;;  %v316_v3 = vmul.f32 0.5, %v306_v30 }
 0x138   :  { %828 = verf.f32 %v324_v36 }
 0x139   :  { %830 = verf.f32 %v323_v37 }
 0x13a   :  { %832 = verf.f32 %v325_v38 }
 0x13d   :  { %v819_v39 = vpop.eup %818 }
 0x13e   :  { %v821_v40 = vpop.eup %820  ;;  %v334_v42 = vadd.f32 1.0, %v819_v39 }
 0x13f   :  { %v823_v41 = vpop.eup %822  ;;  %v336_v44 = vadd.f32 1.0, %v821_v40 }
 0x140   :  { %v825_v43 = vpop.eup %824  ;;  %v335_v46 = vadd.f32 1.0, %v823_v41  ;;  %v342_v54 = vmul.f32 %v334_v42, %v310_v47 }
 0x141   :  { %v337_v49 = vadd.f32 1.0, %v825_v43  ;;  %v827_v50 = vpop.eup %826  ;;  %v344_v57 = vmul.f32 %v336_v44, %v312_v51 }
 0x142   :  { %v343_v52 = vmul.f32 %v335_v46, %v311_v45  ;;  %v829_v53 = vpop.eup %828  ;;  %v338_v58 = vadd.f32 1.0, %v827_v50 }
 0x143   :  { %v345_v55 = vmul.f32 %v337_v49, %v313_v48  ;;  %v831_v56 = vpop.eup %830  ;;  %v340_v60 = vadd.f32 1.0, %v829_v53 }
 0x144   :  { %480 = vmatprep.mubr.f32.mxu0 %v343_v52  ;;  %v833_v59 = vpop.eup %832  ;;  %v339_v62 = vadd.f32 1.0, %v831_v56  ;;  %v346_v6 = vmul.f32 %v338_v58, %v314_v63 }
 0x145   :  { %555 = vmatprep.mubr.f32.mxu1 %v345_v55  ;;  %481 = vmatmul.mubr.f32.vlgmr.msra.gmra.mrb[4].mxu0 %v342_v54  ;;  %v341_v2 = vadd.f32 1.0, %v833_v59  ;;  %v348_v7 = vmul.f32 %v340_v60, %v316_v3 }
 0x146   :  { %556 = vmatmul.mubr.f32.vlgmr.msra.gmra.mrb[4].mxu1 %v344_v57  ;;  %v347_v4 = vmul.f32 %v339_v62, %v315_v61 }
 0x147   :  { %v349_v5 = vmul.f32 %v341_v2, %v317_v1 }
 0x148   :  { %485 = vmatprep.mubr.f32.mxu0 %v347_v4 }
 0x149   :  { %560 = vmatprep.mubr.f32.mxu1 %v349_v5  ;;  %486 = vmatmul.mubr.f32.gmra.mrb[6].mxu0 %v346_v6 }
 0x14a   :  { %561 = vmatmul.mubr.f32.gmra.mrb[6].mxu1 %v348_v7 }
 0x218   :  { %v637_v8 = vpop.f32.mrb[4].mxu0 }
 0x219   :  { %v675_v0 = vpop.f32.mrb[4].mxu1  ;;  %v638_v9 = vpop.f32.mrb[5].mxu0 }
 0x21a   :  { %v639_v10 = vadd.f32 %v638_v9, %v637_v8  ;;  %v676_v11 = vpop.f32.mrb[5].mxu1 }
 0x21b   :  { %v677_v12 = vadd.f32 %v676_v11, %v675_v0 }
 0x21c   :  { %v640_v15 = vpop.f32.mrb[6].mxu0 }
 0x21d   :  { %v558_v14 = vadd.f32 %v677_v12, %v639_v10  ;;  %v678_v16 = vpop.f32.mrb[6].mxu1  ;;  %v641_v17 = vpop.f32.mrb[7].mxu0 }
 0x21e   :  { %v642_v19 = vadd.f32 %v641_v17, %v640_v15  ;;  %v679_v20 = vpop.f32.mrb[7].mxu1 }
 0x21f   :  { %v582_v18 = vadd.f32 %v604_v13, %v558_v14  ;;  %v680_v21 = vadd.f32 %v679_v20, %v678_v16 }
 0x221   :  { %584 = vst [vmem:[#allocation9] sm:$0xff] %v582_v18  ;;  %v563_v22 = vadd.f32 %v680_v21, %v642_v19 }
 0x223   :  { %v583_v23 = vadd.f32 %v604_v13, %v563_v22 }
 0x225   :  { %585 = vst [vmem:[#allocation9 + $0x8] sm:$0xff] %v583_v23 }
 0x226   :  { %911 = shalt.err (!%p908_p0)
}
 0x227   :  { %s912_s12 = scalar_lea.hbm %s1039_s5, 256 }
 0x228   :  { %p913_p1 = scmp.ne.s32.totalorder %s1039_s5, %s912_s12  ;;  %p916_p2 = scmp.lt.u32.totalorder %s912_s12, %s1039_s5 }
 0x22a   :  { %p918_p3 = pnand %p916_p2, %p913_p1 }
 0x22c   :  { %921 = shalt.err (!%p918_p3)
}
 0x22d   :  { %597 = dma.vmem_to_hbm [thread:$0]  %s592_s9, 256, %s1039_s5, [#allocation5], %s932_s1, %s932_s1, %s933_s17  }
 0x22e   :  { %926 = dma.done.wait [#allocation5], 256  }
 0x22f   :  { %927 = vsyncadd [#allocation5], 4294967040 }
 0x230   :  { %601 = vsyncpa [#allocation4], 1 }
 0x231   :  { %602 = vsyncpa [#allocation7], 1 }
 0x232   :  { %603 = vsyncpa [#allocation5], 1 }

</bundles_post_ra>
